<compile_context>
chip_gen: v7x
topology: tpu7x:2x2x1
jax: 0.10.0
libtpu: 0.0.40
codegen_flags: <defaults>
</compile_context>

<pallas_src>
import functools
import math

import jax
import jax.numpy as jnp
from jax.experimental import pallas as pl
from jax.experimental.pallas import tpu as pltpu

# ---------------------------------------------------------------------------
# model dims (small, consistent with the module)
# ---------------------------------------------------------------------------
B = 2          # batch
L = 8          # number of agent/time tokens (2 agents x 4 timesteps)
M = 8          # number of map tokens
D = 32         # d_model
H = 4          # n_head
HD = D // H    # head dim
FF = 64        # dim_feedforward (small for the test)
BL = B * L     # flattened agent tokens
BM = B * M     # flattened map tokens
R_VEC = D + FF           # first row of the bias/LN vectors inside the wmisc slab
WMISC_ROWS = R_VEC + 8   # 104 rows (multiple of 8)
LN_EPS = 1e-5
NEG_INF = -1e30

# Review (v6e/v7x): bf16 weights halve the dominant DMA; gated on tolerance -> off by default.
USE_BF16_WEIGHTS = False


def _layernorm(x, g, b):
    mu = jnp.mean(x, axis=-1, keepdims=True)
    xc = x - mu
    var = jnp.mean(xc * xc, axis=-1, keepdims=True)
    return xc * jax.lax.rsqrt(var + LN_EPS) * g + b


# ---------------------------------------------------------------------------
# the fused kernel (gridless: whole (B, L) problem in one invocation)
# ---------------------------------------------------------------------------
def encoder_layer_kernel(tok_ref, wflat_ref, wmisc_ref, masks_ref, out_ref):
    f32 = jnp.float32
    ee = functools.partial(jnp.einsum, preferred_element_type=f32)

    tok = tok_ref[...]                       # (BL+BM, D) = (32, 32): rows 0:16 src, 16:32 map
    x_src = tok[0:BL, :]                     # (16, 32)
    x_map = tok[BL:BL + BM, :]               # (16, 32)

    # ---- stage 1: every per-head projection in ONE lane-dense MXU matmul ------------
    # column block (g*H + h) of wflat holds the merged (D, D) matrix for
    # group g in {A_self, A_other, A_map, C_agt, C_map}, head h, where
    #   A_*h = (Wq_*h / sqrt(HD)) @ Wk_*h^T   and   C_*h = Wv_*h @ Wo_h.
    w_flat = wflat_ref[...]                  # (D, 5*H*D) = (32, 640)
    proj = jnp.dot(tok.astype(w_flat.dtype), w_flat,
                   preferred_element_type=f32)             # (32, 640)

    def pblk(g, h, r0, r1):                  # static slice of the fused projection
        c = (g * H + h) * D
        return proj[r0:r1, c:c + D]

    # query-side projections stacked head-major along rows (sublane-dense M dim)
    q_agent = jnp.concatenate(
        [pblk(0, h, 0, BL) for h in range(H)] +          # self-attention queries
        [pblk(1, h, 0, BL) for h in range(H)], axis=0)   # other-attention queries  (128, 32)
    q_map = jnp.concatenate([pblk(2, h, 0, BL) for h in range(H)], axis=0)          # (64, 32)

    # value*output projections, rows ordered (head, [agent keys ; map keys])
    u_stack = jnp.concatenate(
        [blk for h in range(H)
         for blk in (pblk(3, h, 0, BL), pblk(4, h, BL, BL + BM))], axis=0)           # (128, 32)

    # ---- stage 2: scores -- two matmuls (keys shared across heads; Wk folded into A) -
    s_agent_all = ee('qr,kr->qk', q_agent, x_src)        # (2*H*BL, BL) = (128, 16)
    s_map_all = ee('qr,kr->qk', q_map, x_map)            # (H*BL,  BM) = (64, 16)

    kbias = masks_ref[0]                     # (H*BL, BL+BM): -1e30 cross-batch (+ src_mask)
    so = masks_ref[1][:, 0:BL]               # (H*BL, BL): 1.0 = same-agent token

    s_self = s_agent_all[0:H * BL, :]
    s_other = s_agent_all[H * BL:2 * H * BL, :]
    s_agent = jnp.where(so > 0.5, s_self, s_other)                        # (64, 16)
    s_joint = jnp.concatenate([s_agent, s_map_all], axis=1) + kbias       # (64, 32)

    # ---- joint softmax over [agent keys ++ map keys]: single max / exp / sum --------
    mx = jnp.max(s_joint, axis=-1, keepdims=True)
    e = jnp.exp(s_joint - mx)
    inv = pl.reciprocal(jnp.sum(e, axis=-1, keepdims=True), approx=True)
    p = e * inv                              # (H*BL, BL+BM)

    # ---- attention output: ONE K=128-dense matmul (sum over heads folded in) --------
    p_lanes = jnp.concatenate([p[h * BL:(h + 1) * BL, :] for h in range(H)],
                              axis=1)                                     # (16, 128)
    attn = jnp.dot(p_lanes, u_stack, preferred_element_type=f32)          # (16, 32)

    # ---- packed FFN weights + bias / LayerNorm vectors ------------------------------
    w1 = wmisc_ref[0:D, 0:FF]                # (32, 64)
    w2 = wmisc_ref[D:D + FF, 0:D]            # (64, 32)
    bo = wmisc_ref[R_VEC + 0:R_VEC + 1, 0:D]
    b2 = wmisc_ref[R_VEC + 1:R_VEC + 2, 0:D]
    g1 = wmisc_ref[R_VEC + 2:R_VEC + 3, 0:D]
    be1 = wmisc_ref[R_VEC + 3:R_VEC + 4, 0:D]
    g2 = wmisc_ref[R_VEC + 4:R_VEC + 5, 0:D]
    be2 = wmisc_ref[R_VEC + 5:R_VEC + 6, 0:D]
    b1 = wmisc_ref[R_VEC + 6:R_VEC + 7, 0:FF]

    # ---- residual + norm1 (dropout1 = identity) --------------------------------------
    x = _layernorm(x_src + attn + bo, g1, be1)

    # ---- feedforward (relu), inner dropout = identity --------------------------------
    h1 = jnp.maximum(jnp.dot(x, w1, preferred_element_type=f32) + b1, 0.0)
    ff = jnp.dot(h1, w2, preferred_element_type=f32) + b2

    # ---- residual + norm2 (dropout2 = identity) --------------------------------------
    x = _layernorm(x + ff, g2, be2)
    out_ref[...] = x.astype(out_ref.dtype)


# ---------------------------------------------------------------------------
# parameter init (PyTorch shapes, stored (in, out))
# ---------------------------------------------------------------------------
def init_params(key):
    ks = jax.random.split(key, 16)
    s = 0.02

    def w(k, shp):
        return (s * jax.random.normal(k, shp)).astype(jnp.float32)

    return dict(
        wq_self=w(ks[0], (D, D)), wk_self=w(ks[1], (D, D)),     # bias_self=False
        wq_other=w(ks[2], (D, D)), wk_other=w(ks[3], (D, D)),   # bias_other=False
        wq_map=w(ks[4], (D, D)), wk_map=w(ks[5], (D, D)),       # bias_map=False
        wv=w(ks[6], (D, D)), wv_map=w(ks[7], (D, D)),
        wo=w(ks[8], (D, D)), bo=jnp.zeros((1, D), jnp.float32),  # bias_out=True
        w1=w(ks[9], (D, FF)), b1=jnp.zeros((1, FF), jnp.float32),
        w2=w(ks[10], (FF, D)), b2=jnp.zeros((1, D), jnp.float32),
        g1=jnp.ones((1, D), jnp.float32), be1=jnp.zeros((1, D), jnp.float32),
        g2=jnp.ones((1, D), jnp.float32), be2=jnp.zeros((1, D), jnp.float32),
    )


# ---------------------------------------------------------------------------
# one-time packing (HOISTED out of the forward path, per the review)
# ---------------------------------------------------------------------------
def pack_params(params):
    """Merge per-head projection weights algebraically and pack into two slabs."""
    scale = 1.0 / math.sqrt(HD)

    def heads_cols(wm):   # (D, D) -> (H, D, HD): per-head column blocks
        return wm.reshape(D, H, HD).transpose(1, 0, 2)

    def heads_rows(wm):   # (D, D) -> (H, HD, D): per-head row blocks
        return wm.reshape(H, HD, D)

    a_self = jnp.einsum('hpd,hrd->hpr', heads_cols(params['wq_self']) * scale,
                        heads_cols(params['wk_self']))
    a_other = jnp.einsum('hpd,hrd->hpr', heads_cols(params['wq_other']) * scale,
                         heads_cols(params['wk_other']))
    a_map = jnp.einsum('hpd,hrd->hpr', heads_cols(params['wq_map']) * scale,
                       heads_cols(params['wk_map']))
    wo_h = heads_rows(params['wo'])
    c_agt = jnp.einsum('hpd,hdr->hpr', heads_cols(params['wv']), wo_h)
    c_map = jnp.einsum('hpd,hdr->hpr', heads_cols(params['wv_map']), wo_h)

    # (5H, D, D) -> lane-dense (D, 5H*D): column block (g*H + h) holds M_{g,h}
    w_all = jnp.concatenate([a_self, a_other, a_map, c_agt, c_map], axis=0)
    w_flat = jnp.transpose(w_all, (1, 0, 2)).reshape(D, 5 * H * D)
    if USE_BF16_WEIGHTS:
        w_flat = w_flat.astype(jnp.bfloat16)

    # FFN weights + all bias / LayerNorm vectors in one (8,128)-aligned slab
    wmisc = jnp.zeros((WMISC_ROWS, FF), jnp.float32)
    wmisc = wmisc.at[0:D, 0:FF].set(params['w1'])
    wmisc = wmisc.at[D:D + FF, 0:D].set(params['w2'])
    vec_rows = jnp.concatenate([params['bo'], params['b2'], params['g1'],
                                params['be1'], params['g2'], params['be2']], axis=0)
    wmisc = wmisc.at[R_VEC:R_VEC + 6, 0:D].set(vec_rows)
    wmisc = wmisc.at[R_VEC + 6:R_VEC + 7, 0:FF].set(params['b1'])
    return w_flat, wmisc


def pack_masks(self_other_mask, src_mask=None):
    """Block-diagonal batch masks, pre-replicated per head, packed into one tensor."""
    eye_b = jnp.eye(B, dtype=jnp.float32)
    so_blk = (eye_b[:, None, :, None] *
              self_other_mask.astype(jnp.float32)[:, :, None, :]).reshape(BL, BL)

    bid_l = jnp.repeat(jnp.arange(B), L)
    bid_m = jnp.repeat(jnp.arange(B), M)
    agent_bias = jnp.where(bid_l[:, None] == bid_l[None, :], 0.0, NEG_INF).astype(jnp.float32)
    map_bias = jnp.where(bid_l[:, None] == bid_m[None, :], 0.0, NEG_INF).astype(jnp.float32)
    if src_mask is not None:   # additive mask on agent keys only
        agent_bias = agent_bias + (eye_b[:, None, :, None] *
                                   src_mask.astype(jnp.float32)[:, :, None, :]
                                   ).reshape(BL, BL)

    kbias_rep = jnp.tile(jnp.concatenate([agent_bias, map_bias], axis=1), (H, 1))  # (64, 32)
    so_rep = jnp.tile(so_blk, (H, 1))                                              # (64, 16)

    masks = jnp.zeros((2, H * BL, BL + BM), jnp.float32)    # (2, 64, 32)
    masks = masks.at[0].set(kbias_rep)
    masks = masks.at[1, :, 0:BL].set(so_rep)
    return masks


# ---------------------------------------------------------------------------
# forward (the only per-call work: concatenate tokens + one pallas_call)
# ---------------------------------------------------------------------------
@jax.jit
def encoder_forward(src, map_feature, w_flat, wmisc, masks):
    tok = jnp.concatenate([src.reshape(BL, D), map_feature.reshape(BM, D)],
                          axis=0).astype(jnp.float32)

    out_flat = pl.pallas_call(
        encoder_layer_kernel,
        out_shape=jax.ShapeDtypeStruct((BL, D), jnp.float32),
        in_specs=[pl.BlockSpec(memory_space=pltpu.MemorySpace.VMEM)] * 4,
        out_specs=pl.BlockSpec(memory_space=pltpu.MemorySpace.VMEM),
        cost_estimate=pl.CostEstimate(flops=2_200_000, transcendentals=2_300,
                                      bytes_accessed=135_000),
    )(tok, w_flat, wmisc, masks)

    return out_flat.reshape(B, L, D), map_feature


def map_agent_aware_encoder_layer(src, self_other_mask, map_feature, params,
                                  src_mask=None):
    """API-parity convenience wrapper (re-packs every call).

    Prefer pack_params / pack_masks once + encoder_forward in hot paths."""
    w_flat, wmisc = pack_params(params)
    masks = pack_masks(self_other_mask, src_mask)
    return encoder_forward(src, map_feature, w_flat, wmisc, masks)


# ---------------------------------------------------------------------------
# pure-JAX reference (un-merged weights, per-batch loops) for a sanity check
# ---------------------------------------------------------------------------
def _reference_forward(src, self_other_mask, map_feature, params, src_mask=None):
    scale = 1.0 / math.sqrt(HD)

    def split_heads(x):   # (N, D) -> (H, N, HD)
        return x.reshape(x.shape[0], H, HD).transpose(1, 0, 2)

    def ln(x, g, b):
        mu = jnp.mean(x, -1, keepdims=True)
        xc = x - mu
        v = jnp.mean(xc * xc, -1, keepdims=True)
        return xc / jnp.sqrt(v + LN_EPS) * g + b

    outs = []
    for bi in range(B):
        x = src[bi]
        mp = map_feature[bi]
        q_s = split_heads(x @ params['wq_self'])
        k_s = split_heads(x @ params['wk_self'])
        q_o = split_heads(x @ params['wq_other'])
        k_o = split_heads(x @ params['wk_other'])
        q_m = split_heads(x @ params['wq_map'])
        k_m = split_heads(mp @ params['wk_map'])
        v_a = split_heads(x @ params['wv'])
        v_m = split_heads(mp @ params['wv_map'])

        s_self = jnp.einsum('hqd,hkd->hqk', q_s, k_s) * scale
        s_other = jnp.einsum('hqd,hkd->hqk', q_o, k_o) * scale
        s_map = jnp.einsum('hqd,hkd->hqk', q_m, k_m) * scale
        s_agent = jnp.where(self_other_mask[bi][None] > 0.5, s_self, s_other)
        if src_mask is not None:
            s_agent = s_agent + src_mask[bi][None]

        p = jax.nn.softmax(jnp.concatenate([s_agent, s_map], axis=-1), axis=-1)
        o = (jnp.einsum('hqk,hkd->hqd', p[:, :, :L], v_a) +
             jnp.einsum('hqk,hkd->hqd', p[:, :, L:], v_m))
        o = o.transpose(1, 0, 2).reshape(L, D) @ params['wo'] + params['bo']

        x1 = ln(x + o, params['g1'], params['be1'])
        ffn = jnp.maximum(x1 @ params['w1'] + params['b1'], 0.0) @ params['w2'] + params['b2']
        outs.append(ln(x1 + ffn, params['g2'], params['be2']))
    return jnp.stack(outs, 0)


if __name__ == "__main__":
    key = jax.random.PRNGKey(0)
    k_src, k_map, k_par = jax.random.split(key, 3)

    src = jax.random.normal(k_src, (B, L, D), jnp.float32)
    map_feature = jax.random.normal(k_map, (B, M, D), jnp.float32)

    # self/other mask: 2 agents x 4 timesteps -> 1.0 when tokens share an agent
    agent_id = jnp.arange(L) // 4
    so = (agent_id[:, None] == agent_id[None, :]).astype(jnp.float32)
    self_other_mask = jnp.broadcast_to(so, (B, L, L))

    params = init_params(k_par)

    # packing hoisted out of the forward path (done once per parameter / mask set)
    w_flat, wmisc = pack_params(params)
    masks = pack_masks(self_other_mask, src_mask=None)

    out, map_out = encoder_forward(src, map_feature, w_flat, wmisc, masks)
    out = jax.block_until_ready(out)
    map_out = jax.block_until_ready(map_out)

    assert out.shape == (B, L, D) and map_out.shape == (B, M, D)
    assert bool(jnp.all(jnp.isfinite(out)))

    ref = _reference_forward(src, self_other_mask, map_feature, params, src_mask=None)
    assert bool(jnp.allclose(out, ref, rtol=2e-2, atol=2e-2))

    print("KERNEL_OK")
</pallas_src>

<mosaic_0001>
module attributes {stable_mosaic.version = 11 : i64} {
  func.func @encoder_layer_kernel(%arg0: memref<32x32xf32, #tpu.memory_space<vmem>>, %arg1: memref<32x640xf32, #tpu.memory_space<vmem>>, %arg2: memref<104x64xf32, #tpu.memory_space<vmem>>, %arg3: memref<2x64x32xf32, #tpu.memory_space<vmem>>, %arg4: memref<16x32xf32, #tpu.memory_space<vmem>>) attributes {dimension_semantics = [], scalar_prefetch = 0 : i64, scratch_operands = 0 : i64, tpu.core_type = #tpu.core_type<tc>} {
    %c0 = arith.constant 0 : index
    %c0_0 = arith.constant 0 : index
    %0 = vector.load %arg0[%c0, %c0_0] : memref<32x32xf32, #tpu.memory_space<vmem>>, vector<32x32xf32>
    %1 = vector.extract_strided_slice %0 {offsets = [0, 0], sizes = [16, 32], strides = [1, 1]} : vector<32x32xf32> to vector<16x32xf32>
    %2 = vector.extract_strided_slice %0 {offsets = [16, 0], sizes = [16, 32], strides = [1, 1]} : vector<32x32xf32> to vector<16x32xf32>
    %c0_1 = arith.constant 0 : index
    %c0_2 = arith.constant 0 : index
    %3 = vector.load %arg1[%c0_1, %c0_2] : memref<32x640xf32, #tpu.memory_space<vmem>>, vector<32x640xf32>
    %cst = arith.constant dense<0.000000e+00> : vector<32x640xf32>
    %4 = tpu.matmul %0, %3, %cst {dimension_numbers = #tpu.dot_dimension_numbers<[1], [0], [0], [1], [0, 0, 1, 1], [], []>} : vector<32x32xf32>, vector<32x640xf32>, vector<32x640xf32> -> vector<32x640xf32>
    %5 = vector.extract_strided_slice %4 {offsets = [0, 0], sizes = [16, 32], strides = [1, 1]} : vector<32x640xf32> to vector<16x32xf32>
    %6 = vector.extract_strided_slice %4 {offsets = [0, 32], sizes = [16, 32], strides = [1, 1]} : vector<32x640xf32> to vector<16x32xf32>
    %7 = vector.extract_strided_slice %4 {offsets = [0, 64], sizes = [16, 32], strides = [1, 1]} : vector<32x640xf32> to vector<16x32xf32>
    %8 = vector.extract_strided_slice %4 {offsets = [0, 96], sizes = [16, 32], strides = [1, 1]} : vector<32x640xf32> to vector<16x32xf32>
    %9 = vector.extract_strided_slice %4 {offsets = [0, 128], sizes = [16, 32], strides = [1, 1]} : vector<32x640xf32> to vector<16x32xf32>
    %10 = vector.extract_strided_slice %4 {offsets = [0, 160], sizes = [16, 32], strides = [1, 1]} : vector<32x640xf32> to vector<16x32xf32>
    %11 = vector.extract_strided_slice %4 {offsets = [0, 192], sizes = [16, 32], strides = [1, 1]} : vector<32x640xf32> to vector<16x32xf32>
    %12 = vector.extract_strided_slice %4 {offsets = [0, 224], sizes = [16, 32], strides = [1, 1]} : vector<32x640xf32> to vector<16x32xf32>
    %13 = tpu.concatenate %5, %6, %7, %8, %9, %10, %11, %12 in 0 : vector<16x32xf32>, vector<16x32xf32>, vector<16x32xf32>, vector<16x32xf32>, vector<16x32xf32>, vector<16x32xf32>, vector<16x32xf32>, vector<16x32xf32> -> vector<128x32xf32>
    %14 = vector.extract_strided_slice %4 {offsets = [0, 256], sizes = [16, 32], strides = [1, 1]} : vector<32x640xf32> to vector<16x32xf32>
    %15 = vector.extract_strided_slice %4 {offsets = [0, 288], sizes = [16, 32], strides = [1, 1]} : vector<32x640xf32> to vector<16x32xf32>
    %16 = vector.extract_strided_slice %4 {offsets = [0, 320], sizes = [16, 32], strides = [1, 1]} : vector<32x640xf32> to vector<16x32xf32>
    %17 = vector.extract_strided_slice %4 {offsets = [0, 352], sizes = [16, 32], strides = [1, 1]} : vector<32x640xf32> to vector<16x32xf32>
    %18 = tpu.concatenate %14, %15, %16, %17 in 0 : vector<16x32xf32>, vector<16x32xf32>, vector<16x32xf32>, vector<16x32xf32> -> vector<64x32xf32>
    %19 = vector.extract_strided_slice %4 {offsets = [0, 384], sizes = [16, 32], strides = [1, 1]} : vector<32x640xf32> to vector<16x32xf32>
    %20 = vector.extract_strided_slice %4 {offsets = [16, 512], sizes = [16, 32], strides = [1, 1]} : vector<32x640xf32> to vector<16x32xf32>
    %21 = vector.extract_strided_slice %4 {offsets = [0, 416], sizes = [16, 32], strides = [1, 1]} : vector<32x640xf32> to vector<16x32xf32>
    %22 = vector.extract_strided_slice %4 {offsets = [16, 544], sizes = [16, 32], strides = [1, 1]} : vector<32x640xf32> to vector<16x32xf32>
    %23 = vector.extract_strided_slice %4 {offsets = [0, 448], sizes = [16, 32], strides = [1, 1]} : vector<32x640xf32> to vector<16x32xf32>
    %24 = vector.extract_strided_slice %4 {offsets = [16, 576], sizes = [16, 32], strides = [1, 1]} : vector<32x640xf32> to vector<16x32xf32>
    %25 = vector.extract_strided_slice %4 {offsets = [0, 480], sizes = [16, 32], strides = [1, 1]} : vector<32x640xf32> to vector<16x32xf32>
    %26 = vector.extract_strided_slice %4 {offsets = [16, 608], sizes = [16, 32], strides = [1, 1]} : vector<32x640xf32> to vector<16x32xf32>
    %27 = tpu.concatenate %19, %20, %21, %22, %23, %24, %25, %26 in 0 : vector<16x32xf32>, vector<16x32xf32>, vector<16x32xf32>, vector<16x32xf32>, vector<16x32xf32>, vector<16x32xf32>, vector<16x32xf32>, vector<16x32xf32> -> vector<128x32xf32>
    "tpu.trace_start"() <{level = 10 : i32, message = "qr,kr->qk"}> : () -> ()
    %cst_3 = arith.constant dense<0.000000e+00> : vector<128x16xf32>
    %28 = tpu.matmul %13, %1, %cst_3 {dimension_numbers = #tpu.dot_dimension_numbers<[1], [1], [0], [0], [0, 0, 1, 0], [], []>} : vector<128x32xf32>, vector<16x32xf32>, vector<128x16xf32> -> vector<128x16xf32>
    %cst_4 = arith.constant dense<0.000000e+00> : vector<64x16xf32>
    %29 = tpu.matmul %18, %2, %cst_4 {dimension_numbers = #tpu.dot_dimension_numbers<[1], [1], [0], [0], [0, 0, 1, 0], [], []>} : vector<64x32xf32>, vector<16x32xf32>, vector<64x16xf32> -> vector<64x16xf32>
    "tpu.trace_stop"() : () -> ()
    %c0_5 = arith.constant 0 : index
    %c0_6 = arith.constant 0 : index
    %c0_7 = arith.constant 0 : index
    %30 = vector.load %arg3[%c0_5, %c0_6, %c0_7] : memref<2x64x32xf32, #tpu.memory_space<vmem>>, vector<1x64x32xf32>
    %31 = vector.shape_cast %30 : vector<1x64x32xf32> to vector<64x32xf32>
    %c1 = arith.constant 1 : index
    %c0_8 = arith.constant 0 : index
    %c0_9 = arith.constant 0 : index
    %32 = vector.load %arg3[%c1, %c0_8, %c0_9] : memref<2x64x32xf32, #tpu.memory_space<vmem>>, vector<1x64x32xf32>
    %33 = vector.shape_cast %32 : vector<1x64x32xf32> to vector<64x32xf32>
    %34 = vector.extract_strided_slice %33 {offsets = [0, 0], sizes = [64, 16], strides = [1, 1]} : vector<64x32xf32> to vector<64x16xf32>
    %35 = vector.extract_strided_slice %28 {offsets = [0, 0], sizes = [64, 16], strides = [1, 1]} : vector<128x16xf32> to vector<64x16xf32>
    %36 = vector.extract_strided_slice %28 {offsets = [64, 0], sizes = [64, 16], strides = [1, 1]} : vector<128x16xf32> to vector<64x16xf32>
    %cst_10 = arith.constant 5.000000e-01 : f32
    %37 = vector.broadcast %cst_10 : f32 to vector<64x16xf32>
    %38 = arith.cmpf ogt, %34, %37 : vector<64x16xf32>
    %39 = arith.select %38, %35, %36 : vector<64x16xi1>, vector<64x16xf32>
    %40 = tpu.concatenate %39, %29 in 1 : vector<64x16xf32>, vector<64x16xf32> -> vector<64x32xf32>
    %41 = arith.addf %40, %31 : vector<64x32xf32>
    %cst_11 = arith.constant dense<0xFF800000> : vector<64xf32>
    %42 = vector.multi_reduction <maximumf>, %41, %cst_11 [1] : vector<64x32xf32> to vector<64xf32>
    %43 = vector.shape_cast %42 : vector<64xf32> to vector<64x1xf32>
    %44 = vector.broadcast %43 : vector<64x1xf32> to vector<64x32xf32>
    %45 = arith.subf %41, %44 : vector<64x32xf32>
    %46 = math.exp %45 : vector<64x32xf32>
    %cst_12 = arith.constant dense<0.000000e+00> : vector<64xf32>
    %47 = vector.multi_reduction <add>, %46, %cst_12 [1] : vector<64x32xf32> to vector<64xf32>
    %48 = vector.shape_cast %47 : vector<64xf32> to vector<64x1xf32>
    %49 = tpu.reciprocal %48 {approx = true} : vector<64x1xf32> -> vector<64x1xf32>
    %50 = vector.broadcast %49 : vector<64x1xf32> to vector<64x32xf32>
    %51 = arith.mulf %46, %50 : vector<64x32xf32>
    %52 = vector.extract_strided_slice %51 {offsets = [0, 0], sizes = [16, 32], strides = [1, 1]} : vector<64x32xf32> to vector<16x32xf32>
    %53 = vector.extract_strided_slice %51 {offsets = [16, 0], sizes = [16, 32], strides = [1, 1]} : vector<64x32xf32> to vector<16x32xf32>
    %54 = vector.extract_strided_slice %51 {offsets = [32, 0], sizes = [16, 32], strides = [1, 1]} : vector<64x32xf32> to vector<16x32xf32>
    %55 = vector.extract_strided_slice %51 {offsets = [48, 0], sizes = [16, 32], strides = [1, 1]} : vector<64x32xf32> to vector<16x32xf32>
    %56 = tpu.concatenate %52, %53, %54, %55 in 1 : vector<16x32xf32>, vector<16x32xf32>, vector<16x32xf32>, vector<16x32xf32> -> vector<16x128xf32>
    %cst_13 = arith.constant dense<0.000000e+00> : vector<16x32xf32>
    %57 = tpu.matmul %56, %27, %cst_13 {dimension_numbers = #tpu.dot_dimension_numbers<[1], [0], [0], [1], [0, 0, 1, 1], [], []>} : vector<16x128xf32>, vector<128x32xf32>, vector<16x32xf32> -> vector<16x32xf32>
    %c0_14 = arith.constant 0 : index
    %c0_15 = arith.constant 0 : index
    %58 = vector.load %arg2[%c0_14, %c0_15] : memref<104x64xf32, #tpu.memory_space<vmem>>, vector<32x64xf32>
    %c32 = arith.constant 32 : index
    %c0_16 = arith.constant 0 : index
    %59 = vector.load %arg2[%c32, %c0_16] : memref<104x64xf32, #tpu.memory_space<vmem>>, vector<64x32xf32>
    %c96 = arith.constant 96 : index
    %c0_17 = arith.constant 0 : index
    %60 = vector.load %arg2[%c96, %c0_17] : memref<104x64xf32, #tpu.memory_space<vmem>>, vector<1x32xf32>
    %c97 = arith.constant 97 : index
    %c0_18 = arith.constant 0 : index
    %61 = vector.load %arg2[%c97, %c0_18] : memref<104x64xf32, #tpu.memory_space<vmem>>, vector<1x32xf32>
    %c98 = arith.constant 98 : index
    %c0_19 = arith.constant 0 : index
    %62 = vector.load %arg2[%c98, %c0_19] : memref<104x64xf32, #tpu.memory_space<vmem>>, vector<1x32xf32>
    %c99 = arith.constant 99 : index
    %c0_20 = arith.constant 0 : index
    %63 = vector.load %arg2[%c99, %c0_20] : memref<104x64xf32, #tpu.memory_space<vmem>>, vector<1x32xf32>
    %c100 = arith.constant 100 : index
    %c0_21 = arith.constant 0 : index
    %64 = vector.load %arg2[%c100, %c0_21] : memref<104x64xf32, #tpu.memory_space<vmem>>, vector<1x32xf32>
    %c101 = arith.constant 101 : index
    %c0_22 = arith.constant 0 : index
    %65 = vector.load %arg2[%c101, %c0_22] : memref<104x64xf32, #tpu.memory_space<vmem>>, vector<1x32xf32>
    %c102 = arith.constant 102 : index
    %c0_23 = arith.constant 0 : index
    %66 = vector.load %arg2[%c102, %c0_23] : memref<104x64xf32, #tpu.memory_space<vmem>>, vector<1x64xf32>
    %67 = arith.addf %1, %57 : vector<16x32xf32>
    %68 = vector.broadcast %60 : vector<1x32xf32> to vector<16x32xf32>
    %69 = arith.addf %67, %68 : vector<16x32xf32>
    %cst_24 = arith.constant dense<0.000000e+00> : vector<16xf32>
    %70 = vector.multi_reduction <add>, %69, %cst_24 [1] : vector<16x32xf32> to vector<16xf32>
    %71 = vector.shape_cast %70 : vector<16xf32> to vector<16x1xf32>
    %cst_25 = arith.constant 3.200000e+01 : f32
    %72 = vector.broadcast %cst_25 : f32 to vector<16x1xf32>
    %73 = arith.divf %71, %72 : vector<16x1xf32>
    %74 = vector.broadcast %73 : vector<16x1xf32> to vector<16x32xf32>
    %75 = arith.subf %69, %74 : vector<16x32xf32>
    %76 = arith.mulf %75, %75 : vector<16x32xf32>
    %cst_26 = arith.constant dense<0.000000e+00> : vector<16xf32>
    %77 = vector.multi_reduction <add>, %76, %cst_26 [1] : vector<16x32xf32> to vector<16xf32>
    %78 = vector.shape_cast %77 : vector<16xf32> to vector<16x1xf32>
    %cst_27 = arith.constant 3.200000e+01 : f32
    %79 = vector.broadcast %cst_27 : f32 to vector<16x1xf32>
    %80 = arith.divf %78, %79 : vector<16x1xf32>
    %cst_28 = arith.constant 9.99999974E-6 : f32
    %81 = vector.broadcast %cst_28 : f32 to vector<16x1xf32>
    %82 = arith.addf %80, %81 : vector<16x1xf32>
    %83 = math.rsqrt %82 : vector<16x1xf32>
    %84 = vector.broadcast %83 : vector<16x1xf32> to vector<16x32xf32>
    %85 = arith.mulf %75, %84 : vector<16x32xf32>
    %86 = vector.broadcast %62 : vector<1x32xf32> to vector<16x32xf32>
    %87 = arith.mulf %85, %86 : vector<16x32xf32>
    %88 = vector.broadcast %63 : vector<1x32xf32> to vector<16x32xf32>
    %89 = arith.addf %87, %88 : vector<16x32xf32>
    %cst_29 = arith.constant dense<0.000000e+00> : vector<16x64xf32>
    %90 = tpu.matmul %89, %58, %cst_29 {dimension_numbers = #tpu.dot_dimension_numbers<[1], [0], [0], [1], [0, 0, 1, 1], [], []>} : vector<16x32xf32>, vector<32x64xf32>, vector<16x64xf32> -> vector<16x64xf32>
    %91 = vector.broadcast %66 : vector<1x64xf32> to vector<16x64xf32>
    %92 = arith.addf %90, %91 : vector<16x64xf32>
    %cst_30 = arith.constant 0.000000e+00 : f32
    %93 = vector.broadcast %cst_30 : f32 to vector<16x64xf32>
    %94 = arith.maximumf %92, %93 : vector<16x64xf32>
    %cst_31 = arith.constant dense<0.000000e+00> : vector<16x32xf32>
    %95 = tpu.matmul %94, %59, %cst_31 {dimension_numbers = #tpu.dot_dimension_numbers<[1], [0], [0], [1], [0, 0, 1, 1], [], []>} : vector<16x64xf32>, vector<64x32xf32>, vector<16x32xf32> -> vector<16x32xf32>
    %96 = vector.broadcast %61 : vector<1x32xf32> to vector<16x32xf32>
    %97 = arith.addf %95, %96 : vector<16x32xf32>
    %98 = arith.addf %89, %97 : vector<16x32xf32>
    %cst_32 = arith.constant dense<0.000000e+00> : vector<16xf32>
    %99 = vector.multi_reduction <add>, %98, %cst_32 [1] : vector<16x32xf32> to vector<16xf32>
    %100 = vector.shape_cast %99 : vector<16xf32> to vector<16x1xf32>
    %cst_33 = arith.constant 3.200000e+01 : f32
    %101 = vector.broadcast %cst_33 : f32 to vector<16x1xf32>
    %102 = arith.divf %100, %101 : vector<16x1xf32>
    %103 = vector.broadcast %102 : vector<16x1xf32> to vector<16x32xf32>
    %104 = arith.subf %98, %103 : vector<16x32xf32>
    %105 = arith.mulf %104, %104 : vector<16x32xf32>
    %cst_34 = arith.constant dense<0.000000e+00> : vector<16xf32>
    %106 = vector.multi_reduction <add>, %105, %cst_34 [1] : vector<16x32xf32> to vector<16xf32>
    %107 = vector.shape_cast %106 : vector<16xf32> to vector<16x1xf32>
    %cst_35 = arith.constant 3.200000e+01 : f32
    %108 = vector.broadcast %cst_35 : f32 to vector<16x1xf32>
    %109 = arith.divf %107, %108 : vector<16x1xf32>
    %cst_36 = arith.constant 9.99999974E-6 : f32
    %110 = vector.broadcast %cst_36 : f32 to vector<16x1xf32>
    %111 = arith.addf %109, %110 : vector<16x1xf32>
    %112 = math.rsqrt %111 : vector<16x1xf32>
    %113 = vector.broadcast %112 : vector<16x1xf32> to vector<16x32xf32>
    %114 = arith.mulf %104, %113 : vector<16x32xf32>
    %115 = vector.broadcast %64 : vector<1x32xf32> to vector<16x32xf32>
    %116 = arith.mulf %114, %115 : vector<16x32xf32>
    %117 = vector.broadcast %65 : vector<1x32xf32> to vector<16x32xf32>
    %118 = arith.addf %116, %117 : vector<16x32xf32>
    %c0_37 = arith.constant 0 : index
    %c0_38 = arith.constant 0 : index
    %119 = vector.load %arg4[%c0_37, %c0_38] : memref<16x32xf32, #tpu.memory_space<vmem>>, vector<16x32xf32>
    tpu.vector_store %arg4[%c0_37, %c0_38], %118 {strides = array<i32>} : memref<16x32xf32, #tpu.memory_space<vmem>>, vector<16x32xf32>,
    return
  }
}

</mosaic_0001>

<bundles_post_ra>
// kernel: encoder_forward.1
= control target key start
LH: loop header
LB: loop body
LE: loop exit
PB: predicated region body
PF: predicated region fallthrough
CT: control target
= control target key end

     0   :  { %v1722_v7 = vmov 0.0   ;;  %vm42_vm0 = vcmask 261120   ;;  %s2101_s0 = inlined_call_operand.vmem [shape: f32[32,32], index: 0, kind: input, shape index: {}]   ;;  %s2102_s1 = inlined_call_operand.vmem [shape: f32[32,640], index: 1, kind: input, shape index: {}]   ;;  %s2103_s2 = inlined_call_operand.vmem [shape: f32[104,64], index: 2, kind: input, shape index: {}]   ;;  %s2104_s3 = inlined_call_operand.vmem [shape: f32[2,64,32], index: 3, kind: input, shape index: {}]   ;;  %s2105_s4 = inlined_call_operand.hbm [shape: f32[16,32], index: 4, kind: output, shape index: {}]  }
   0x1   :  { %v25_v0 = vld [vmem:[%s2102_s1 + $0x18] sm:$0xff]  ;;  %v30_v1 = vld [vmem:[%s2102_s1 + $0x40] sm:$0xff]  ;;  %v24_v2 = vld [vmem:[%s2102_s1 + $0x10] sm:$0xff]  ;;  %204 = vmatprep.mubr.f32.mxu1 %v1722_v7  ;;  %119 = vmatprep.mubr.f32.mxu0 %v1722_v7 }
   0x2   :  { %v1521_v3 = vpack.c.bf16 %v30_v1, %v25_v0  ;;  %v29_v4 = vld [vmem:[%s2102_s1 + $0x38] sm:$0xff]  ;;  %v23_v5 = vld [vmem:[%s2102_s1 + $0x8] sm:$0xff]  ;;  %v28_v6 = vld [vmem:[%s2102_s1 + $0x30] sm:$0xff] }
   0x3   :  { %v1523_v8 = vpack.c.bf16 %v29_v4, %v24_v2  ;;  %v1513_v9 = vpack.c.bf16 %v28_v6, %v23_v5  ;;  %v35_v10 = vld [vmem:[%s2102_s1 + $0x68] sm:$0xff]  ;;  %v40_v11 = vld [vmem:[%s2102_s1 + $0x90] sm:$0xff]  ;;  %v22_v12 = vld [vmem:[%s2102_s1] sm:$0xff] }
   0x4   :  { %1522 = vmatprep.subr.bf16.mxu1 %v1521_v3  ;;  %v1525_v13 = vpack.c.bf16 %v40_v11, %v35_v10  ;;  %v27_v14 = vld [vmem:[%s2102_s1 + $0x28] sm:$0xff]  ;;  %v34_v15 = vld [vmem:[%s2102_s1 + $0x60] sm:$0xff]  ;;  %v33_v19 = vld [vmem:[%s2102_s1 + $0x58] sm:$0xff] }
   0x5   :  { %v39_v16 = vld [vmem:[%s2102_s1 + $0x88] sm:$0xff]  ;;  %1524 = vmatpush1.bf16.msra.mxu1 %v1523_v8  ;;  %1514 = vmatprep.subr.bf16.mxu0 %v1513_v9  ;;  %v1515_v17 = vpack.c.bf16 %v27_v14, %v22_v12  ;;  %v38_v20 = vld [vmem:[%s2102_s1 + $0x80] sm:$0xff]  ;;  %v32_v22 = vld [vmem:[%s2102_s1 + $0x50] sm:$0xff] }
   0x6   :  { %v1527_v18 = vpack.c.bf16 %v39_v16, %v34_v15  ;;  %1526 = vmatprep.subr.bf16.mxu1 %v1525_v13  ;;  %v1517_v21 = vpack.c.bf16 %v38_v20, %v33_v19  ;;  %v37_v23 = vld [vmem:[%s2102_s1 + $0x78] sm:$0xff]  ;;  %v26_v25 = vld [vmem:[%s2102_s1 + $0x20] sm:$0xff]  ;;  %v31_v26 = vld [vmem:[%s2102_s1 + $0x48] sm:$0xff] }
   0x7   :  { %1516 = vmatpush1.bf16.msra.mxu0 %v1515_v17  ;;  %v1519_v24 = vpack.c.bf16 %v37_v23, %v32_v22  ;;  %v1529_v27 = vpack.c.bf16 %v31_v26, %v26_v25  ;;  %v1812_v28 = vld [vmem:[%s2101_s0] sm:$0xff]  ;;  %v36_v29 = vld [vmem:[%s2102_s1 + $0x70] sm:$0xff]  ;;  %v41_v30 = vld [vmem:[%s2102_s1 + $0x98] sm:$0xff] }
   0x8   :  { %1518 = vmatprep.subr.bf16.mxu0 %v1517_v21 }
   0x9   :  { %1528 = vmatpush1.bf16.msra.mxu1 %v1527_v18 }
   0xa   :  { %9 = vsyncpa [#allocation3], 0  ;;  %v1533_v31 = vpack.c.bf16 %v41_v30, %v36_v29  ;;  %v1825_v32 = vld [vmem:[%s2101_s0 + $0x8] sm:$0xff]  ;;  %v20_v33 = vld [vmem:[%s2101_s0 + $0x10] sm:$0xff]  ;;  %s1724_s10 = smov 96   ;;  %s1725_s11 = smov 32  }
   0xb   :  { %1520 = vmatpush1.bf16.msra.mxu0 %v1519_v24  ;;  %v21_v34 = vld [vmem:[%s2101_s0 + $0x18] sm:$0xff]  ;;  %vm1839_vm1 = vmpackc.low %vm42_vm0, %vm42_vm0  ;;  %v1537_v37 = vpack.c.bf16 %v1825_v32, %v1812_v28  ;;  %s1723_s0 = smov 64   ;;  %s1726_s12 = smov 16   ;;  %vm753_vm10 = vcmask 130048   ;;  %vm884_vm11 = vcmask 523264   ;;  %vm887_vm12 = vcmask 785408  }
   0xc   :  { %1265 = vmatmul.mubr.msk.f32.vlgmr.msra.gmra.mrb[0].mxu1 %vm42_vm0, %v1812_v28  ;;  %1530 = vmatprep.subr.bf16.mxu0 %v1529_v27  ;;  %v1543_v35 = vpack.c.bf16 %v21_v34, %v20_v33  ;;  %v1304_v36 = vld [vmem:[%s2104_s3 + $0x58] sm:$0xff]  ;;  %s1727_s25 = smov [#allocation2]  }
   0xd   :  { %210 = vmatprep.mubr.f32.mxu1 %v1722_v7  ;;  %1539 = vmatprep.subr.msk.bf16.mxu1 %vm1839_vm1, %v1537_v37  ;;  %vm708_vm4 = vcmp.gt.f32.partialorder %v1304_v36, 0.5  ;;  %s1250_s26 = sshll.u32 %s1727_s25, 4  ;;  %s1251_s26 = int_to_ptr.vmem [resolvable:$true] %s1250_s26 }
   0xe   :  { %1261 = vmatmul.mubr.msk.f32.vlgmr.msra.gmra.mrb[0].mxu0 %vm42_vm0, %v1812_v28  ;;  %s1698_s27 = scalar_lea.vmem %s1251_s26, 256  ;;  %p1703_p1 = scmp.lt.s32.totalorder %s1251_s26, %s1251_s26 }
   0xf   :  { %125 = vmatprep.mubr.f32.mxu0 %v1722_v7  ;;  %1532 = vmatpush3.bf16.msra.mxu0 %v1529_v27  ;;  %p1699_p0 = scmp.ne.s32.totalorder %s1251_s26, %s1698_s27  ;;  %p1704_p2 = scmp.lt.s32.totalorder %s1698_s27, %s1698_s27 }
  0x10   :  { %1266 = vmatmul.mubr.msk.f32.gmra.mrb[2].mxu1 %vm42_vm0, %v1825_v32  ;;  %1534 = vmatprep.subr.bf16.mxu0 %v1533_v31 }
  0x11   :  { %216 = vmatprep.mubr.f32.mxu1 %v1722_v7  ;;  %p1705_p3 = por %p1704_p2, %p1703_p1 }
  0x12   :  { %1262 = vmatmul.mubr.msk.f32.gmra.mrb[2].mxu0 %vm42_vm0, %v1825_v32  ;;  %1542 = vmatpush3.bf16.xpose.msk.msra.mxu1 %vm1839_vm1, %v1537_v37 }
  0x13   :  { %131 = vmatprep.mubr.f32.mxu0 %v1722_v7  ;;  %1536 = vmatpush3.bf16.msra.mxu0 %v1533_v31  ;;  %v1302_v31 = vld [vmem:[%s2104_s3 + $0x48] sm:$0xff]  ;;  %p1706_p4 = pnand %p1705_p3, %p1699_p0 }
  0x14   :  { %1545 = vmatprep.subr.msk.bf16.mxu0 %vm1839_vm1, %v1543_v35  ;;  %1267 = vmatmul.mubr.msk.f32.gmra.mrb[4].mxu1 %vm42_vm0, %v20_v33  ;;  %vm706_vm2 = vcmp.gt.f32.partialorder %v1302_v31, 0.5  ;;  %v689_v31 = vld [vmem:[%s2104_s3 + $0x8] sm:$0xff] }
  0x15   :  { %220 = vmatprep.mubr.f32.mxu1 %v1722_v7 }
  0x16   :  { %1263 = vmatmul.mubr.msk.f32.gmra.mrb[4].mxu0 %vm42_vm0, %v20_v33 }
  0x17   :  { %135 = vmatprep.mubr.f32.mxu0 %v1722_v7 }
  0x18   :  { %1268 = vmatmul.mubr.msk.f32.gmra.mrb[6].mxu1 %vm42_vm0, %v21_v34 }
  0x1a   :  { %1264 = vmatmul.mubr.msk.f32.gmra.mrb[6].mxu0 %vm42_vm0, %v21_v34 }
  0x1b   :  { %1398 = vmatprep.mubr.msk.f32.mxu0 %vm42_vm0, %v1812_v28 }
  0x1e   :  { %1399 = vmatmul.mubr.msk.f32.vlgmr.msra.gmra.mrb[8].mxu0 %vm42_vm0, %v1825_v32 }
  0x1f   :  { %1548 = vmatpush3.bf16.xpose.msk.msra.mxu0 %vm1839_vm1, %v1543_v35  ;;  %1401 = vmatprep.mubr.msk.f32.mxu0 %vm42_vm0, %v20_v33 }
  0x22   :  { %1402 = vmatmul.mubr.msk.f32.gmra.mrb[10].mxu0 %vm42_vm0, %v21_v34  ;;  %v1301_v34 = vld [vmem:[%s2104_s3 + $0x40] sm:$0xff] }
  0x23   :  { %vm705_vm3 = vcmp.gt.f32.partialorder %v1301_v34, 0.5 }
  0xdf   :  { %v206_v38 = vpop.f32.mrb[0].mxu1 }
  0xe0   :  { %342 = vrot.lane.b32.xlu1 %v206_v38, %s1723_s0  ;;  %338 = vrot.lane.b32.xlu0 %v206_v38, %s1724_s10  ;;  %v208_v39 = vpop.f32.mrb[1].mxu1 }
  0xe1   :  { %1436 = vmatprep.mubr.msk.f32.mxu0 %vm42_vm0, %v206_v38  ;;  %v121_v40 = vpop.f32.mrb[0].mxu0 }
  0xe2   :  { %v1868_v41 = vpop.f32.mrb[1].mxu0  ;;  %1408 = vmatprep.mubr.msk.f32.mxu1 %vm42_vm0, %v121_v40 }
  0xe3   :  { %v212_v42 = vpop.f32.mrb[2].mxu1 }
  0xe4   :  { %344 = vrot.lane.b32.xlu1 %v212_v42, %s1723_s0  ;;  %340 = vrot.lane.b32.xlu0 %v212_v42, %s1724_s10  ;;  %v214_v43 = vpop.f32.mrb[3].mxu1 }
  0xe5   :  { %1437 = vmatmul.mubr.msk.f32.vlgmr.msra.gmra.mrb[12].mxu0 %vm42_vm0, %v212_v42  ;;  %v127_v44 = vpop.f32.mrb[2].mxu0  ;;  %v1549_v45 = vpack.c.bf16 %v214_v43, %v208_v39  ;;  %v1874_v46 = vpack.i.bf16 %v214_v43, %v208_v39 }
  0xe6   :  { %1409 = vmatmul.mubr.msk.f32.vlgmr.msra.gmra.mrb[8].mxu1 %vm42_vm0, %v127_v44  ;;  %v129_v47 = vpop.f32.mrb[3].mxu0 }
  0xe7   :  { %1550 = vmatprep.subr.bf16.mxu1 %v1549_v45  ;;  %v218_v48 = vpop.f32.mrb[4].mxu1 }
  0xe8   :  { %348 = vrot.lane.b32.xlu1 %v212_v42, %s1725_s11  ;;  %346 = vrot.lane.b32.xlu0 %v206_v38, %s1725_s11  ;;  %v219_v49 = vpop.f32.mrb[5].mxu1  ;;  %v1303_v38 = vld [vmem:[%s2104_s3 + $0x50] sm:$0xff]  ;;  %v1306_v42 = vld [vmem:[%s2104_s3 + $0x68] sm:$0xff] }
  0xe9   :  { %1552 = vmatpush3.bf16.msra.mxu1 %v1549_v45  ;;  %v133_v50 = vpop.f32.mrb[4].mxu0  ;;  %vm707_vm5 = vcmp.gt.f32.partialorder %v1303_v38, 0.5  ;;  %vm710_vm6 = vcmp.gt.f32.partialorder %v1306_v42, 0.5  ;;  %v1308_v49 = vld [vmem:[%s2104_s3 + $0x78] sm:$0xff] }
  0xea   :  { %v134_v51 = vpop.f32.mrb[5].mxu0  ;;  %vm712_vm8 = vcmp.gt.f32.partialorder %v1308_v49, 0.5 }
  0xeb   :  { %v222_v52 = vpop.f32.mrb[6].mxu1  ;;  %v1307_v51 = vld [vmem:[%s2104_s3 + $0x70] sm:$0xff] }
  0xec   :  { %310 = vrot.lane.b32.xlu0 %v121_v40, %s1724_s10  ;;  %312 = vrot.lane.b32.xlu1 %v127_v44, %s1724_s10  ;;  %v223_v53 = vpop.f32.mrb[7].mxu1  ;;  %vm711_vm9 = vcmp.gt.f32.partialorder %v1307_v51, 0.5 }
  0xed   :  { %v137_v54 = vpop.f32.mrb[6].mxu0 }
  0xee   :  { %v138_v55 = vpop.f32.mrb[7].mxu0 }
  0xf0   :  { %314 = vrot.lane.b32.xlu0 %v121_v40, %s1723_s0  ;;  %316 = vrot.lane.b32.xlu1 %v127_v44, %s1723_s0 }
  0xf1   :  { %v1400_v56 = vpop.f32.mrb[8].mxu0 }
  0xf2   :  { %v291_v57 = vpop.f32.mrb[9].mxu0 }
  0xf4   :  { %318 = vrot.lane.b32.xlu0 %v121_v40, %s1725_s11  ;;  %320 = vrot.lane.b32.xlu1 %v127_v44, %s1725_s11  ;;  %v1305_v44 = vld [vmem:[%s2104_s3 + $0x60] sm:$0xff] }
  0xf5   :  { %v1403_v58 = vpop.f32.mrb[10].mxu0  ;;  %vm709_vm7 = vcmp.gt.f32.partialorder %v1305_v44, 0.5 }
  0xf6   :  { %v299_v59 = vpop.f32.mrb[11].mxu0 }
  0xf7   :  { %v1553_v60 = vpack.c.bf16 %v1403_v58, %v299_v59  ;;  %v1915_v15 = vpack.i.bf16 %v1403_v58, %v299_v59  ;;  %v691_v59 = vld [vmem:[%s2104_s3 + $0x18] sm:$0xff] }
  0xf8   :  { %324 = vrot.lane.b32.xlu0 %v1868_v41, %s1724_s10  ;;  %326 = vrot.lane.b32.xlu1 %v129_v47, %s1724_s10 }
  0xf9   :  { %1554 = vmatprep.subr.bf16.mxu1 %v1553_v60 }
  0xfa   :  { %1556 = vmatpush3.bf16.msra.mxu1 %v1553_v60 }
  0xfc   :  { %328 = vrot.lane.b32.xlu0 %v1868_v41, %s1723_s0  ;;  %330 = vrot.lane.b32.xlu1 %v129_v47, %s1723_s0 }
 0x100   :  { %332 = vrot.lane.b32.xlu0 %v1868_v41, %s1725_s11  ;;  %334 = vrot.lane.b32.xlu1 %v129_v47, %s1725_s11 }
 0x152   :  { %v343_v61 = vpop.permute.xlu1 %342  ;;  %v339_v62 = vpop.permute.xlu0 %338 }
 0x153   :  { %1439 = vmatprep.mubr.msk.f32.mxu0 %vm42_vm0, %v339_v62 }
 0x156   :  { %v345_v63 = vpop.permute.xlu1 %344  ;;  %v341_v0 = vpop.permute.xlu0 %340 }
 0x157   :  { %1440 = vmatmul.mubr.msk.f32.gmra.mrb[14].mxu0 %vm42_vm0, %v341_v0 }
 0x158   :  { %1442 = vmatprep.mubr.msk.f32.mxu0 %vm42_vm0, %v343_v61  ;;  %v690_v61 = vld [vmem:[%s2104_s3 + $0x10] sm:$0xff] }
 0x15a   :  { %v349_v1 = vpop.permute.xlu1 %348  ;;  %v347_v2 = vpop.permute.xlu0 %346 }
 0x15b   :  { %1443 = vmatmul.mubr.msk.f32.gmra.mrb[16].mxu0 %vm42_vm0, %v345_v63 }
 0x15c   :  { %1445 = vmatprep.mubr.msk.f32.mxu0 %vm42_vm0, %v347_v2 }
 0x15e   :  { %v311_v3 = vpop.permute.xlu0 %310  ;;  %v313_v4 = vpop.permute.xlu1 %312 }
 0x15f   :  { %1446 = vmatmul.mubr.msk.f32.gmra.mrb[18].mxu0 %vm42_vm0, %v349_v1  ;;  %1411 = vmatprep.mubr.msk.f32.mxu1 %vm42_vm0, %v311_v3  ;;  %v693_v3 = vld [vmem:[%s2104_s3 + $0x28] sm:$0xff] }
 0x160   :  { %1412 = vmatmul.mubr.msk.f32.gmra.mrb[10].mxu1 %vm42_vm0, %v313_v4 }
 0x162   :  { %v315_v5 = vpop.permute.xlu0 %314  ;;  %v317_v6 = vpop.permute.xlu1 %316 }
 0x163   :  { %1414 = vmatprep.mubr.msk.f32.mxu1 %vm42_vm0, %v315_v5 }
 0x164   :  { %1415 = vmatmul.mubr.msk.f32.gmra.mrb[12].mxu1 %vm42_vm0, %v317_v6 }
 0x166   :  { %v319_v7 = vpop.permute.xlu0 %318  ;;  %v321_v8 = vpop.permute.xlu1 %320 }
 0x167   :  { %1417 = vmatprep.mubr.msk.f32.mxu1 %vm42_vm0, %v319_v7 }
 0x168   :  { %1418 = vmatmul.mubr.msk.f32.gmra.mrb[14].mxu1 %vm42_vm0, %v321_v8 }
 0x169   :  { %1420 = vmatprep.mubr.msk.f32.mxu1 %vm42_vm0, %v1868_v41 }
 0x16a   :  { %v325_v9 = vpop.permute.xlu0 %324  ;;  %v327_v10 = vpop.permute.xlu1 %326 }
 0x16c   :  { %1421 = vmatmul.mubr.msk.f32.gmra.mrb[16].mxu1 %vm42_vm0, %v129_v47 }
 0x16d   :  { %1423 = vmatprep.mubr.msk.f32.mxu1 %vm42_vm0, %v325_v9 }
 0x16e   :  { %v329_v11 = vpop.permute.xlu0 %328  ;;  %v331_v12 = vpop.permute.xlu1 %330 }
 0x170   :  { %1424 = vmatmul.mubr.msk.f32.gmra.mrb[18].mxu1 %vm42_vm0, %v327_v10 }
 0x171   :  { %1426 = vmatprep.mubr.msk.f32.mxu1 %vm42_vm0, %v329_v11  ;;  %v692_v11 = vld [vmem:[%s2104_s3 + $0x20] sm:$0xff] }
 0x172   :  { %v333_v13 = vpop.permute.xlu0 %332  ;;  %v335_v14 = vpop.permute.xlu1 %334 }
 0x174   :  { %1427 = vmatmul.mubr.msk.f32.gmra.mrb[20].mxu1 %vm42_vm0, %v331_v12 }
 0x175   :  { %1429 = vmatprep.mubr.msk.f32.mxu1 %vm42_vm0, %v333_v13 }
 0x178   :  { %1430 = vmatmul.mubr.msk.f32.gmra.mrb[22].mxu1 %vm42_vm0, %v335_v14  ;;  %v694_v14 = vld [vmem:[%s2104_s3 + $0x30] sm:$0xff] }
 0x1b8   :  { %v1438_v16 = vpop.f32.mrb[12].mxu0 }
 0x1b9   :  { %v649_v17 = vpop.f32.mrb[13].mxu0  ;;  %v1410_v18 = vpop.f32.mrb[8].mxu1 }
 0x1ba   :  { %v488_v19 = vpop.f32.mrb[9].mxu1 }
 0x22a   :  { %v1441_v20 = vpop.f32.mrb[14].mxu0 }
 0x22b   :  { %735 = vrot.lane.b32.xlu1 %v1441_v20, %s1726_s12  ;;  %v659_v21 = vpop.f32.mrb[15].mxu0  ;;  %v695_v20 = vld [vmem:[%s2104_s3 + $0x38] sm:$0xff] }
 0x22c   :  { %733 = vrot.lane.b32.xlu0 %v659_v21, %s1726_s12 }
 0x22e   :  { %v1444_v22 = vpop.f32.mrb[16].mxu0 }
 0x22f   :  { %739 = vrot.lane.b32.xlu1 %v1444_v22, %s1726_s12  ;;  %v669_v23 = vpop.f32.mrb[17].mxu0 }
 0x230   :  { %737 = vrot.lane.b32.xlu0 %v669_v23, %s1726_s12  ;;  %v688_v23 = vld [vmem:[%s2104_s3] sm:$0xff] }
 0x232   :  { %v1447_v24 = vpop.f32.mrb[18].mxu0 }
 0x233   :  { %743 = vrot.lane.b32.xlu1 %v1447_v24, %s1726_s12  ;;  %v679_v25 = vpop.f32.mrb[19].mxu0  ;;  %v1413_v26 = vpop.f32.mrb[10].mxu1 }
 0x234   :  { %741 = vrot.lane.b32.xlu0 %v679_v25, %s1726_s12  ;;  %v498_v27 = vpop.f32.mrb[11].mxu1 }
 0x237   :  { %731 = vrot.lane.b32.xlu1 %v1438_v16, %s1726_s12  ;;  %v1416_v29 = vpop.f32.mrb[12].mxu1 }
 0x238   :  { %729 = vrot.lane.b32.xlu0 %v649_v17, %s1726_s12  ;;  %v508_v30 = vpop.f32.mrb[13].mxu1 }
 0x23b   :  { %v1419_v33 = vpop.f32.mrb[14].mxu1 }
 0x23c   :  { %v518_v35 = vpop.f32.mrb[15].mxu1 }
 0x23f   :  { %v1422_v37 = vpop.f32.mrb[16].mxu1 }
 0x240   :  { %v714_v39 = vsel %vm706_vm2, %v1410_v18, %v1422_v37  ;;  %v528_v40 = vpop.f32.mrb[17].mxu1 }
 0x241   :  { %v713_v41 = vsel %vm705_vm3, %v488_v19, %v528_v40 }
 0x243   :  { %v1425_v43 = vpop.f32.mrb[18].mxu1 }
 0x244   :  { %v716_v45 = vsel %vm708_vm4, %v1413_v26, %v1425_v43  ;;  %v538_v47 = vpop.f32.mrb[19].mxu1 }
 0x245   :  { %v715_v48 = vsel %vm707_vm5, %v498_v27, %v538_v47 }
 0x247   :  { %v1428_v50 = vpop.f32.mrb[20].mxu1 }
 0x248   :  { %v718_v52 = vsel %vm710_vm6, %v1416_v29, %v1428_v50  ;;  %v548_v53 = vpop.f32.mrb[21].mxu1 }
 0x249   :  { %v717_v54 = vsel %vm709_vm7, %v508_v30, %v548_v53 }
 0x24b   :  { %v1431_v55 = vpop.f32.mrb[22].mxu1 }
 0x24c   :  { %v720_v56 = vsel %vm712_vm8, %v1419_v33, %v1431_v55  ;;  %v558_v57 = vpop.f32.mrb[23].mxu1 }
 0x24d   :  { %v719_v58 = vsel %vm711_vm9, %v518_v35, %v558_v57 }
 0x29d   :  { %v736_v60 = vpop.permute.xlu1 %735 }
 0x29e   :  { %v757_v62 = vsel %vm753_vm10, %v716_v45, %v736_v60  ;;  %v734_v63 = vpop.permute.xlu0 %733 }
 0x29f   :  { %v756_v0 = vsel %vm753_vm10, %v715_v48, %v734_v63  ;;  %v765_v1 = vadd.f32 %v757_v62, %v691_v59 }
 0x2a0   :  { %v764_v2 = vadd.f32 %v756_v0, %v690_v61 }
 0x2a1   :  { %v740_v4 = vpop.permute.xlu1 %739  ;;  %v779_v5 = vsel %vm42_vm0, %v765_v1, -inf }
 0x2a2   :  { %v759_v6 = vsel %vm753_vm10, %v718_v52, %v740_v4  ;;  %v738_v7 = vpop.permute.xlu0 %737  ;;  %780 = vmax.xlane.f32.xlu1 %v779_v5  ;;  %v776_v8 = vsel %vm42_vm0, %v764_v2, -inf }
 0x2a3   :  { %v758_v9 = vsel %vm753_vm10, %v717_v54, %v738_v7  ;;  %777 = vmax.xlane.f32.xlu0 %v776_v8  ;;  %v767_v10 = vadd.f32 %v759_v6, %v693_v3 }
 0x2a4   :  { %v766_v17 = vadd.f32 %v758_v9, %v692_v11 }
 0x2a5   :  { %v744_v12 = vpop.permute.xlu1 %743  ;;  %v785_v13 = vsel %vm42_vm0, %v767_v10, -inf }
 0x2a6   :  { %v742_v16 = vpop.permute.xlu0 %741  ;;  %v761_v18 = vsel %vm753_vm10, %v720_v56, %v744_v12  ;;  %v782_v25 = vsel %vm42_vm0, %v766_v17, -inf }
 0x2a7   :  { %v760_v19 = vsel %vm753_vm10, %v719_v58, %v742_v16  ;;  %786 = vmax.xlane.f32.xlu0 %v785_v13  ;;  %v769_v27 = vadd.f32 %v761_v18, %v695_v20 }
 0x2a8   :  { %v768_v21 = vadd.f32 %v760_v19, %v694_v14 }
 0x2a9   :  { %v732_v22 = vpop.permute.xlu1 %731  ;;  %v791_v34 = vsel %vm42_vm0, %v769_v27, -inf }
 0x2aa   :  { %v730_v24 = vpop.permute.xlu0 %729  ;;  %v788_v26 = vsel %vm42_vm0, %v768_v21, -inf  ;;  %v755_v29 = vsel %vm753_vm10, %v714_v39, %v732_v22 }
 0x2ab   :  { %v754_v30 = vsel %vm753_vm10, %v713_v41, %v730_v24  ;;  %783 = vmax.xlane.f32.xlu0 %v782_v25  ;;  %789 = vmax.xlane.f32.xlu1 %v788_v26  ;;  %v763_v36 = vadd.f32 %v755_v29, %v689_v31 }
 0x2ac   :  { %v762_v33 = vadd.f32 %v754_v30, %v688_v23 }
 0x2ad   :  { %v773_v37 = vsel %vm42_vm0, %v763_v36, -inf }
 0x2ae   :  { %v770_v35 = vsel %vm42_vm0, %v762_v33, -inf }
 0x2af   :  { %792 = vmax.xlane.f32.xlu0 %v791_v34  ;;  %771 = vmax.xlane.f32.xlu1 %v770_v35 }
 0x2b3   :  { %774 = vmax.xlane.f32.xlu0 %v773_v37 }
 0x32f   :  { %v781_v38 = vpop.xlane.xlu1 %780 }
 0x330   :  { %v797_v39 = vsub.f32 %v765_v1, %v781_v38  ;;  %v778_v40 = vpop.xlane.xlu0 %777 }
 0x331   :  { %v796_v41 = vsub.f32 %v764_v2, %v778_v40 }
 0x332   :  { %v808_v42 = vmul.f32 1.442695, %v797_v39 }
 0x333   :  { %v806_v43 = vmul.f32 1.442695, %v796_v41 }
 0x334   :  { %1658 = vpow2.f32 %v808_v42  ;;  %v787_v44 = vpop.xlane.xlu0 %786 }
 0x335   :  { %1660 = vpow2.f32 %v806_v43  ;;  %v799_v45 = vsub.f32 %v767_v10, %v787_v44 }
 0x337   :  { %v812_v47 = vmul.f32 1.442695, %v799_v45 }
 0x338   :  { %v790_v48 = vpop.xlane.xlu1 %789  ;;  %v784_v49 = vpop.xlane.xlu0 %783 }
 0x339   :  { %1662 = vpow2.f32 %v812_v47  ;;  %v800_v50 = vsub.f32 %v768_v21, %v790_v48  ;;  %v798_v51 = vsub.f32 %v766_v17, %v784_v49 }
 0x33b   :  { %v810_v52 = vmul.f32 1.442695, %v798_v51  ;;  %v814_v53 = vmul.f32 1.442695, %v800_v50 }
 0x33c   :  { %v772_v54 = vpop.xlane.xlu1 %771  ;;  %v793_v55 = vpop.xlane.xlu0 %792 }
 0x33d   :  { %v794_v56 = vsub.f32 %v762_v33, %v772_v54  ;;  %v801_v57 = vsub.f32 %v769_v27, %v793_v55  ;;  %1664 = vpow2.f32 %v810_v52 }
 0x33e   :  { %v1659_v58 = vpop.eup %1658  ;;  %1666 = vpow2.f32 %v814_v53 }
 0x33f   :  { %v1661_v59 = vpop.eup %1660  ;;  %v816_v60 = vmul.f32 1.442695, %v801_v57  ;;  %v827_v61 = vsel %vm42_vm0, %v1659_v58, 0.0  ;;  %v802_v62 = vmul.f32 1.442695, %v794_v56 }
 0x340   :  { %828 = vadd.xlane.f32.xlu0 %v827_v61  ;;  %v775_v63 = vpop.xlane.xlu0 %774  ;;  %v824_v0 = vsel %vm42_vm0, %v1661_v59, 0.0 }
 0x341   :  { %v795_v1 = vsub.f32 %v763_v36, %v775_v63  ;;  %825 = vadd.xlane.f32.xlu1 %v824_v0  ;;  %1668 = vpow2.f32 %v816_v60 }
 0x342   :  { %1670 = vpow2.f32 %v802_v62 }
 0x343   :  { %v1663_v2 = vpop.eup %1662  ;;  %v804_v3 = vmul.f32 1.442695, %v795_v1 }
 0x344   :  { %v833_v4 = vsel %vm42_vm0, %v1663_v2, 0.0 }
 0x345   :  { %1672 = vpow2.f32 %v804_v3  ;;  %834 = vadd.xlane.f32.xlu0 %v833_v4 }
 0x347   :  { %v1665_v5 = vpop.eup %1664 }
 0x348   :  { %v830_v6 = vsel %vm42_vm0, %v1665_v5, 0.0  ;;  %v1667_v7 = vpop.eup %1666 }
 0x349   :  { %831 = vadd.xlane.f32.xlu1 %v830_v6  ;;  %v836_v9 = vsel %vm42_vm0, %v1667_v7, 0.0 }
 0x34b   :  { %v1669_v8 = vpop.eup %1668 }
 0x34c   :  { %v839_v10 = vsel %vm42_vm0, %v1669_v8, 0.0  ;;  %v1987_v11 = vpop.eup %1670 }
 0x34d   :  { %837 = vadd.xlane.f32.xlu1 %v836_v9  ;;  %840 = vadd.xlane.f32.xlu0 %v839_v10  ;;  %v818_v14 = vsel %vm42_vm0, %v1987_v11, 0.0 }
 0x34f   :  { %v1989_v12 = vpop.eup %1672 }
 0x350   :  { %v821_v13 = vsel %vm42_vm0, %v1989_v12, 0.0 }
 0x351   :  { %819 = vadd.xlane.f32.xlu1 %v818_v14  ;;  %822 = vadd.xlane.f32.xlu0 %v821_v13 }
 0x362   :  { %1614 = vrot.lane.b32.xlu1 %v1874_v46, %s1724_s10 }
 0x366   :  { %1624 = vrot.lane.b32.xlu1 %v1874_v46, %s1723_s0 }
 0x367   :  { %1619 = vrot.lane.b32.xlu0 %v1915_v15, %s1724_s10 }
 0x36a   :  { %1629 = vrot.lane.b32.xlu1 %v1915_v15, %s1723_s0 }
 0x36b   :  { %1634 = vrot.lane.b32.xlu0 %v1874_v46, %s1725_s11 }
 0x36e   :  { %1639 = vrot.lane.b32.xlu1 %v1915_v15, %s1725_s11 }
 0x3cd   :  { %v829_v16 = vpop.xlane.xlu0 %828 }
 0x3ce   :  { %1674 = vrcp.f32 %v829_v16  ;;  %v826_v17 = vpop.xlane.xlu1 %825 }
 0x3cf   :  { %1676 = vrcp.f32 %v826_v17 }
 0x3d2   :  { %v835_v18 = vpop.xlane.xlu0 %834 }
 0x3d3   :  { %1678 = vrcp.f32 %v835_v18 }
 0x3d6   :  { %v832_v19 = vpop.xlane.xlu1 %831 }
 0x3d7   :  { %1680 = vrcp.f32 %v832_v19 }
 0x3d8   :  { %v1675_v20 = vpop.eup %1674 }
 0x3d9   :  { %v1677_v21 = vpop.eup %1676  ;;  %v853_v22 = vmul.f32 %v1675_v20, %v1659_v58 }
 0x3da   :  { %v852_v23 = vmul.f32 %v1677_v21, %v1661_v59  ;;  %v838_v24 = vpop.xlane.xlu1 %837  ;;  %v841_v25 = vpop.xlane.xlu0 %840 }
 0x3db   :  { %1682 = vrcp.f32 %v838_v24 }
 0x3dc   :  { %v1643_v26 = vpack.i.bf16 %v853_v22, %v852_v23  ;;  %1684 = vrcp.f32 %v841_v25 }
 0x3dd   :  { %v1679_v27 = vpop.eup %1678 }
 0x3de   :  { %1644 = vrot.lane.b32.xlu0 %v1643_v26, %s1725_s11  ;;  %v820_v46 = vpop.xlane.xlu1 %819  ;;  %v823_v15 = vpop.xlane.xlu0 %822  ;;  %v855_v34 = vmul.f32 %v1679_v27, %v1663_v2 }
 0x3df   :  { %1686 = vrcp.f32 %v820_v46 }
 0x3e0   :  { %1688 = vrcp.f32 %v823_v15 }
 0x3e1   :  { %v1681_v29 = vpop.eup %1680 }
 0x3e2   :  { %v1615_v30 = vpop.permute.xlu1 %1614  ;;  %v1620_v31 = vpop.permute.xlu0 %1619  ;;  %v854_v33 = vmul.f32 %v1681_v29, %v1665_v5 }
 0x3e3   :  { %v1617_v35 = vunpack.i.h.bf16 %v1615_v30  ;;  %v1616_v36 = vunpack.i.l.bf16 %v1615_v30  ;;  %v1622_v37 = vunpack.i.h.bf16 %v1620_v31  ;;  %v1621_v38 = vunpack.i.l.bf16 %v1620_v31 }
 0x3e4   :  { %v1648_v39 = vpack.i.bf16 %v855_v34, %v854_v33 }
 0x3e5   :  { %v1683_v40 = vpop.eup %1682  ;;  %v1557_v41 = vpack.c.bf16 %v1617_v35, %v1616_v36  ;;  %v1561_v45 = vpack.c.bf16 %v1622_v37, %v1621_v38  ;;  %v965_v37 = vld [vmem:[%s2103_s2] sm:$0xff]  ;;  %v966_v38 = vld [vmem:[%s2103_s2 + $0x8] sm:$0xff] }
 0x3e6   :  { %v1685_v42 = vpop.eup %1684  ;;  %v1625_v43 = vpop.permute.xlu1 %1624  ;;  %1649 = vrot.lane.b32.xlu1 %v1648_v39, %s1723_s0  ;;  %v856_v44 = vmul.f32 %v1683_v40, %v1667_v7  ;;  %v1581_v39 = vpack.c.bf16 %v966_v38, %v965_v37  ;;  %v967_v40 = vld [vmem:[%s2103_s2 + $0x10] sm:$0xff] }
 0x3e7   :  { %v1627_v47 = vunpack.i.h.bf16 %v1625_v43  ;;  %v1626_v48 = vunpack.i.l.bf16 %v1625_v43  ;;  %1558 = vmatprep.subr.bf16.mxu1 %v1557_v41  ;;  %v857_v49 = vmul.f32 %v1685_v42, %v1669_v8  ;;  %v1635_v55 = vpop.permute.xlu0 %1634  ;;  %v969_v43 = vld [vmem:[%s2103_s2 + $0x20] sm:$0xff] }
 0x3e8   :  { %1560 = vmatpush3.bf16.msra.mxu1 %v1557_v41  ;;  %v1637_v56 = vunpack.i.h.bf16 %v1635_v55  ;;  %v1636_v57 = vunpack.i.l.bf16 %v1635_v55  ;;  %1582 = vmatprep.subr.bf16.mxu0 %v1581_v39  ;;  %v968_v41 = vld [vmem:[%s2103_s2 + $0x18] sm:$0xff] }
 0x3e9   :  { %1562 = vmatprep.subr.bf16.mxu1 %v1561_v45  ;;  %v1653_v51 = vpack.i.bf16 %v857_v49, %v856_v44  ;;  %v1565_v52 = vpack.c.bf16 %v1627_v47, %v1626_v48  ;;  %v1687_v1 = vpop.eup %1686  ;;  %1584 = vmatpush3.bf16.msra.mxu0 %v1581_v39  ;;  %v1585_v42 = vpack.c.bf16 %v968_v41, %v967_v40  ;;  %v970_v44 = vld [vmem:[%s2103_s2 + $0x28] sm:$0xff]  ;;  %v1318_v40 = vld [vmem:[%s2103_s2 + $0x64] ss:$0 sm:$0xff] }
 0x3ea   :  { %v1630_v50 = vpop.permute.xlu1 %1629  ;;  %v1573_v60 = vpack.c.bf16 %v1637_v56, %v1636_v57  ;;  %v1689_v3 = vpop.eup %1688  ;;  %v850_v9 = vmul.f32 %v1687_v1, %v1987_v11  ;;  %v1309_v11 = vld [vmem:[%s2103_s2 + $0x60] ss:$0 sm:$0xff] }
 0x3eb   :  { %v1632_v53 = vunpack.i.h.bf16 %v1630_v50  ;;  %v1631_v54 = vunpack.i.l.bf16 %v1630_v50  ;;  %1654 = vrot.lane.b32.xlu0 %v1653_v51, %s1724_s10  ;;  %v851_v8 = vmul.f32 %v1689_v3, %v1989_v12  ;;  %1586 = vmatprep.subr.bf16.mxu0 %v1585_v42  ;;  %v974_v3 = vld [vmem:[%s2103_s2 + $0x48] sm:$0xff] }
 0x3ec   :  { %1564 = vmatpush3.bf16.msra.mxu1 %v1561_v45  ;;  %v1589_v45 = vpack.c.bf16 %v970_v44, %v969_v43  ;;  %v1319_v44 = vld [vmem:[%s2103_s2 + $0x65] ss:$0 sm:$0xff] }
 0x3ed   :  { %1566 = vmatprep.subr.bf16.mxu1 %v1565_v52  ;;  %v1569_v58 = vpack.c.bf16 %v1632_v53, %v1631_v54  ;;  %1588 = vmatpush3.bf16.msra.mxu0 %v1585_v42  ;;  %v1310_v54 = vld [vmem:[%s2103_s2 + $0x62] ss:$0 sm:$0xff] }
 0x3ee   :  { %v1640_v59 = vpop.permute.xlu1 %1639  ;;  %1590 = vmatprep.subr.bf16.mxu0 %v1589_v45 }
 0x3ef   :  { %v1642_v61 = vunpack.i.h.bf16 %v1640_v59  ;;  %v1641_v62 = vunpack.i.l.bf16 %v1640_v59 }
 0x3f0   :  { %1568 = vmatpush3.bf16.msra.mxu1 %v1565_v52 }
 0x3f1   :  { %1570 = vmatprep.subr.bf16.mxu1 %v1569_v58  ;;  %v1577_v63 = vpack.c.bf16 %v1642_v61, %v1641_v62  ;;  %v971_v61 = vld [vmem:[%s2103_s2 + $0x30] sm:$0xff]  ;;  %v972_v62 = vld [vmem:[%s2103_s2 + $0x38] sm:$0xff] }
 0x3f2   :  { %v1593_v1 = vpack.c.bf16 %v972_v62, %v971_v61 }
 0x3f4   :  { %1572 = vmatpush3.bf16.msra.mxu1 %v1569_v58  ;;  %v1311_v58 = vld [vmem:[%s2103_s2 + $0x63] ss:$0 sm:$0xff] }
 0x3f5   :  { %1574 = vmatprep.subr.bf16.mxu1 %v1573_v60 }
 0x3f8   :  { %1576 = vmatpush3.bf16.msra.mxu1 %v1573_v60 }
 0x3f9   :  { %1578 = vmatprep.subr.bf16.mxu1 %v1577_v63 }
 0x3fc   :  { %1580 = vmatpush3.bf16.msra.mxu1 %v1577_v63 }
 0x450   :  { %v1645_v0 = vpop.permute.xlu0 %1644 }
 0x451   :  { %v1647_v4 = vunpack.i.h.bf16 %v1645_v0  ;;  %v1646_v5 = vunpack.i.l.bf16 %v1645_v0 }
 0x453   :  { %v883_v13 = vsel %vm42_vm0, %v851_v8, %v1647_v4  ;;  %v882_v17 = vsel %vm42_vm0, %v850_v9, %v1646_v5  ;;  %v975_v5 = vld [vmem:[%s2103_s2 + $0x50] sm:$0xff]  ;;  %v1312_v8 = vld [vmem:[%s2103_s2 + $0x66] ss:$0 sm:$0xff] }
 0x458   :  { %v1650_v2 = vpop.permute.xlu1 %1649 }
 0x459   :  { %v1652_v6 = vunpack.i.h.bf16 %v1650_v2  ;;  %v1651_v7 = vunpack.i.l.bf16 %v1650_v2  ;;  %v973_v2 = vld [vmem:[%s2103_s2 + $0x40] sm:$0xff] }
 0x45a   :  { %v1597_v4 = vpack.c.bf16 %v974_v3, %v973_v2 }
 0x45b   :  { %v886_v18 = vsel %vm884_vm11, %v883_v13, %v1652_v6  ;;  %v885_v19 = vsel %vm884_vm11, %v882_v17, %v1651_v7  ;;  %v976_v6 = vld [vmem:[%s2103_s2 + $0x58] sm:$0xff] }
 0x45c   :  { %v1601_v7 = vpack.c.bf16 %v976_v6, %v975_v5 }
 0x45d   :  { %v1655_v10 = vpop.permute.xlu0 %1654 }
 0x45e   :  { %v1657_v14 = vunpack.i.h.bf16 %v1655_v10  ;;  %v1656_v16 = vunpack.i.l.bf16 %v1655_v10 }
 0x460   :  { %v888_v20 = vsel %vm887_vm12, %v885_v19, %v1656_v16  ;;  %v889_v21 = vsel %vm887_vm12, %v886_v18, %v1657_v14  ;;  %v1315_v18 = vld [vmem:[%s2103_s2 + $0x61] ss:$0 sm:$0xff] }
 0x461   :  { %1480 = vmatprep.mubr.f32.mxu1 %v888_v20 }
 0x462   :  { %1481 = vmatmul.mubr.f32.vlgmr.msra.gmra.mrb[24].mxu1 %v889_v21 }
 0x535   :  { %v1482_v12 = vpop.f32.mrb[24].mxu1 }
 0x536   :  { %v985_v22 = vadd.f32 %v1482_v12, %v1825_v32  ;;  %v956_v23 = vpop.f32.mrb[25].mxu1 }
 0x537   :  { %v984_v24 = vadd.f32 %v956_v23, %v1812_v28 }
 0x538   :  { %v991_v25 = vadd.f32 %v1309_v11, %v985_v22 }
 0x539   :  { %v990_v26 = vadd.f32 %v1309_v11, %v984_v24 }
 0x53a   :  { %v995_v46 = vsel %vm42_vm0, %v991_v25, 0.0 }
 0x53b   :  { %996 = vadd.xlane.f32.xlu0 %v995_v46  ;;  %v992_v15 = vsel %vm42_vm0, %v990_v26, 0.0 }
 0x53c   :  { %993 = vadd.xlane.f32.xlu1 %v992_v15 }
 0x5c8   :  { %v997_v27 = vpop.xlane.xlu0 %996 }
 0x5c9   :  { %v1000_v29 = vmul.f32 0.03125, %v997_v27  ;;  %v994_v30 = vpop.xlane.xlu1 %993 }
 0x5ca   :  { %v999_v31 = vmul.f32 0.03125, %v994_v30 }
 0x5cb   :  { %v1002_v33 = vsub.f32 %v991_v25, %v1000_v29 }
 0x5cc   :  { %v1001_v34 = vsub.f32 %v990_v26, %v999_v31 }
 0x5cd   :  { %v1004_v35 = vmul.f32 %v1002_v33, %v1002_v33 }
 0x5ce   :  { %v1003_v36 = vmul.f32 %v1001_v34, %v1001_v34 }
 0x5cf   :  { %v1008_v32 = vsel %vm42_vm0, %v1004_v35, 0.0 }
 0x5d0   :  { %1009 = vadd.xlane.f32.xlu1 %v1008_v32  ;;  %v1005_v28 = vsel %vm42_vm0, %v1003_v36, 0.0 }
 0x5d1   :  { %1006 = vadd.xlane.f32.xlu0 %v1005_v28 }
 0x65d   :  { %v1010_v47 = vpop.xlane.xlu1 %1009 }
 0x65e   :  { %v1012_v48 = vmul.f32 0.03125, %v1010_v47  ;;  %v1007_v49 = vpop.xlane.xlu0 %1006 }
 0x65f   :  { %v1011_v50 = vmul.f32 0.03125, %v1007_v49 }
 0x660   :  { %v1014_v51 = vadd.f32 1e-05, %v1012_v48 }
 0x661   :  { %v1013_v52 = vadd.f32 1e-05, %v1011_v50 }
 0x662   :  { %1690 = vrsqrt.f32 %v1014_v51 }
 0x663   :  { %1692 = vrsqrt.f32 %v1013_v52 }
 0x66c   :  { %v1691_v53 = vpop.eup %1690 }
 0x66d   :  { %v1693_v55 = vpop.eup %1692  ;;  %v1018_v56 = vmul.f32 %v1691_v53, %v1002_v33 }
 0x66e   :  { %v1017_v57 = vmul.f32 %v1693_v55, %v1001_v34 }
 0x66f   :  { %v1024_v59 = vmul.f32 %v1310_v54, %v1018_v56 }
 0x670   :  { %v1023_v60 = vmul.f32 %v1310_v54, %v1017_v57 }
 0x671   :  { %v1030_v0 = vadd.f32 %v1311_v58, %v1024_v59 }
 0x672   :  { %v1029_v63 = vadd.f32 %v1311_v58, %v1023_v60 }
 0x674   :  { %1491 = vmatprep.mubr.msk.f32.mxu0 %vm42_vm0, %v1029_v63 }
 0x675   :  { %1492 = vmatmul.mubr.msk.f32.vlgmr.msra.gmra.mrb[20].mxu0 %vm42_vm0, %v1030_v0 }
 0x676   :  { %1592 = vmatpush3.bf16.msra.mxu0 %v1589_v45 }
 0x677   :  { %1594 = vmatprep.subr.bf16.mxu0 %v1593_v1 }
 0x67a   :  { %1596 = vmatpush3.bf16.msra.mxu0 %v1593_v1 }
 0x67b   :  { %1598 = vmatprep.subr.bf16.mxu0 %v1597_v4 }
 0x67e   :  { %1600 = vmatpush3.bf16.msra.mxu0 %v1597_v4 }
 0x67f   :  { %1602 = vmatprep.subr.bf16.mxu0 %v1601_v7 }
 0x682   :  { %1604 = vmatpush3.bf16.msra.mxu0 %v1601_v7 }
 0x748   :  { %v1493_v9 = vpop.f32.mrb[20].mxu0 }
 0x749   :  { %v1113_v10 = vadd.f32 %v1493_v9, %v1312_v8  ;;  %v1107_v13 = vpop.f32.mrb[21].mxu0 }
 0x74a   :  { %v1108_v14 = vadd.f32 %v1312_v8, %v1107_v13 }
 0x74b   :  { %v1117_v17 = vmax.f32 %v1113_v10, 0.0 }
 0x74c   :  { %v1116_v16 = vmax.f32 %v1108_v14, 0.0 }
 0x74e   :  { %1510 = vmatprep.mubr.msk.f32.mxu0 %vm884_vm11, %v1116_v16 }
 0x74f   :  { %1511 = vmatmul.mubr.msk.f32.vlgmr.msra.gmra.mrb[22].mxu0 %vm884_vm11, %v1117_v17 }
 0x822   :  { %v1512_v19 = vpop.f32.mrb[22].mxu0 }
 0x823   :  { %v1200_v20 = vadd.f32 %v1512_v19, %v1315_v18  ;;  %v1194_v21 = vpop.f32.mrb[23].mxu0 }
 0x824   :  { %v1195_v12 = vadd.f32 %v1315_v18, %v1194_v21 }
 0x825   :  { %v1204_v11 = vadd.f32 %v1200_v20, %v1030_v0 }
 0x826   :  { %v1203_v22 = vadd.f32 %v1195_v12, %v1029_v63 }
 0x827   :  { %v1208_v23 = vsel %vm42_vm0, %v1204_v11, 0.0 }
 0x828   :  { %1209 = vadd.xlane.f32.xlu1 %v1208_v23  ;;  %v1205_v24 = vsel %vm42_vm0, %v1203_v22, 0.0 }
 0x829   :  { %1206 = vadd.xlane.f32.xlu0 %v1205_v24 }
 0x8b5   :  { %v1210_v25 = vpop.xlane.xlu1 %1209 }
 0x8b6   :  { %v1212_v26 = vmul.f32 0.03125, %v1210_v25  ;;  %v1207_v46 = vpop.xlane.xlu0 %1206 }
 0x8b7   :  { %v1211_v15 = vmul.f32 0.03125, %v1207_v46 }
 0x8b8   :  { %v1214_v27 = vsub.f32 %v1204_v11, %v1212_v26 }
 0x8b9   :  { %v1213_v29 = vsub.f32 %v1203_v22, %v1211_v15 }
 0x8ba   :  { %v1216_v30 = vmul.f32 %v1214_v27, %v1214_v27 }
 0x8bb   :  { %v1215_v31 = vmul.f32 %v1213_v29, %v1213_v29 }
 0x8bc   :  { %v1220_v33 = vsel %vm42_vm0, %v1216_v30, 0.0 }
 0x8bd   :  { %1221 = vadd.xlane.f32.xlu1 %v1220_v33  ;;  %v1217_v34 = vsel %vm42_vm0, %v1215_v31, 0.0 }
 0x8be   :  { %1218 = vadd.xlane.f32.xlu0 %v1217_v34 }
 0x94a   :  { %v1222_v35 = vpop.xlane.xlu1 %1221 }
 0x94b   :  { %v1224_v36 = vmul.f32 0.03125, %v1222_v35  ;;  %v1219_v32 = vpop.xlane.xlu0 %1218 }
 0x94c   :  { %v1223_v28 = vmul.f32 0.03125, %v1219_v32 }
 0x94d   :  { %v1226_v37 = vadd.f32 1e-05, %v1224_v36 }
 0x94e   :  { %v1225_v38 = vadd.f32 1e-05, %v1223_v28 }
 0x94f   :  { %1694 = vrsqrt.f32 %v1226_v37 }
 0x950   :  { %1696 = vrsqrt.f32 %v1225_v38 }
 0x959   :  { %v1695_v39 = vpop.eup %1694 }
 0x95a   :  { %v1697_v41 = vpop.eup %1696  ;;  %v1230_v42 = vmul.f32 %v1695_v39, %v1214_v27 }
 0x95b   :  { %v1229_v43 = vmul.f32 %v1697_v41, %v1213_v29 }
 0x95c   :  { %v1236_v45 = vmul.f32 %v1318_v40, %v1230_v42 }
 0x95d   :  { %v1235_v47 = vmul.f32 %v1318_v40, %v1229_v43 }
 0x95e   :  { %v1242_v48 = vadd.f32 %v1319_v44, %v1236_v45 }
 0x95f   :  { %v1241_v49 = vadd.f32 %v1319_v44, %v1235_v47 }
 0x960   :  { %1244 = vst.msk [vmem:[#allocation2 + $0x8] sm:$0xff] %vm42_vm0, %v1242_v48 }
 0x961   :  { %1243 = vst.msk [vmem:[#allocation2] sm:$0xff] %vm42_vm0, %v1241_v49 }
 0x962   :  { %1709 = shalt.err (!%p1706_p4)
}
 0x963   :  { %s1710_s29 = scalar_lea.hbm %s2105_s4, 256 }
 0x964   :  { %p1711_p5 = scmp.ne.s32.totalorder %s2105_s4, %s1710_s29  ;;  %p1714_p6 = scmp.lt.u32.totalorder %s1710_s29, %s2105_s4 }
 0x966   :  { %p1716_p7 = pnand %p1714_p6, %p1711_p5 }
 0x968   :  { %1719 = shalt.err (!%p1716_p7)
}
 0x969   :  { %s1728_s1 = smov 128   ;;  %s1729_s8 = smov 8  }
 0x96a   :  { %1256 = dma.vmem_to_hbm [thread:$0]  %s1251_s26, 256, %s2105_s4, [#allocation3], %s1728_s1, %s1728_s1, %s1729_s8  }
 0x96b   :  { %1720 = dma.done.wait [#allocation3], 256  }
 0x96c   :  { %1721 = vsyncadd [#allocation3], 4294967040 }
 0x96d   :  { %1260 = vsyncpa [#allocation3], 1 }

</bundles_post_ra>
